<compile_context>
chip_gen: v7x
topology: tpu7x:2x2x1
jax: 0.10.0
libtpu: 0.0.40
codegen_flags: <defaults>
</compile_context>

<pallas_src>
import functools

import numpy as np
import jax
import jax.numpy as jnp
from jax import lax
from jax.experimental import pallas as pl
from jax.experimental.pallas import tpu as pltpu


def _silu(x):
    return x * jax.nn.sigmoid(x)


# ----------------------------------------------------------------------------
# pltpu.roll rotation-direction self-check (documented to match jnp.roll; we
# verify once at setup so the conv taps stay correct across library versions).
# ----------------------------------------------------------------------------
@functools.lru_cache(maxsize=None)
def _roll_is_np_style() -> bool:
    def k(x_ref, o_ref):
        o_ref[...] = pltpu.roll(x_ref[...], shift=1, axis=1)

    x = jnp.arange(128, dtype=jnp.float32).reshape(1, 128)
    y = pl.pallas_call(
        k, out_shape=jax.ShapeDtypeStruct((1, 128), jnp.float32))(x)
    return bool(jax.device_get(y)[0, 0] == 127.0)


# ----------------------------------------------------------------------------
# Precomputed (numpy, compile-time constant) 0/1 masks marking the in-image
# source pixels of each of the 9 conv taps in the flattened (H*W) pixel axis.
# ----------------------------------------------------------------------------
def _build_tap_masks(H, W):
    hh, ww = np.meshgrid(np.arange(H), np.arange(W), indexing="ij")
    hh = hh.reshape(-1)
    ww = ww.reshape(-1)
    masks = []
    for ky in range(3):
        for kx in range(3):
            dy, dx = ky - 1, kx - 1
            valid = ((hh + dy >= 0) & (hh + dy < H) &
                     (ww + dx >= 0) & (ww + dx < W))
            masks.append(valid.astype(np.float32))
    return jnp.asarray(np.stack(masks)[:, None, :])      # (9, 1, H*W)


# ----------------------------------------------------------------------------
# Fused C3 kernel (one batch element per grid step, (C, H*W) layout).
# ----------------------------------------------------------------------------
def _make_c3_kernel(H, W, n_blocks, shortcut):
    M = H * W
    np_roll = _roll_is_np_style()

    # Flat-pixel shift per tap, (ky, kx) order; we need src[m] = t[m + s].
    shifts = []
    for ky in range(3):
        for kx in range(3):
            s = (ky - 1) * W + (kx - 1)
            shifts.append(((-s) % M) if np_roll else (s % M))

    def kernel(x_ref, masks_ref, w1_ref, b1_ref, w2_ref, b2_ref,
               wm1_ref, bm1_ref, wm2_ref, bm2_ref,
               w3h_ref, w3y_ref, b3_ref, o_ref):
        f32 = jnp.float32

        def pw(wt, b, a):              # 1x1 conv + folded-BN bias + SiLU
            y = jnp.dot(wt, a, preferred_element_type=f32) + b
            return _silu(y)

        x = x_ref[0]                                      # (C1, M), lane-dense
        y1 = pw(w1_ref[...], b1_ref[...], x)              # (c_, M)
        y2 = pw(w2_ref[...], b2_ref[...], x)              # (c_, M)

        h = y1
        for i in range(n_blocks):                         # static unroll
            t = pw(wm1_ref[i], bm1_ref[i], h)             # (c_, M)
            acc = jnp.zeros(t.shape, f32)
            for idx in range(9):                          # 3x3 conv: 9 taps
                if shifts[idx] == 0:
                    src = t                               # center tap
                else:
                    src = pltpu.roll(t, shift=shifts[idx], axis=1)
                    src = src * masks_ref[idx]            # (1, M) boundary mask
                acc = acc + jnp.dot(wm2_ref[i, idx], src,
                                    preferred_element_type=f32)
            o = _silu(acc + bm2_ref[i])
            h = h + o if shortcut else o                  # residual in VMEM

        # cv3 without materializing concat([h, y2]).
        y = (jnp.dot(w3h_ref[...], h, preferred_element_type=f32)
             + jnp.dot(w3y_ref[...], y2, preferred_element_type=f32)
             + b3_ref[...])
        o_ref[0] = _silu(y).astype(o_ref.dtype)

    return kernel


def c3_forward(x_nchw, kp, *, shortcut=True):
    """Fused C3 forward. x_nchw: (N, C1, H, W); kp from prepare_kernel_params."""
    N, C1, H, W = x_nchw.shape
    M = H * W
    c_ = kp["w1"].shape[0]
    C2 = kp["w3h"].shape[0]
    n_blocks = kp["wm1"].shape[0]
    assert kp["w1"].shape[1] == C1

    x_flat = x_nchw.reshape(N, C1, M)        # free, contiguous reshape
    masks = _build_tap_masks(H, W)           # (9, 1, M) constant
    kernel = _make_c3_kernel(H, W, n_blocks, shortcut)

    grid_spec = pltpu.PrefetchScalarGridSpec(
        num_scalar_prefetch=0,
        grid=(N,),
        in_specs=[
            pl.BlockSpec((1, C1, M), lambda n: (n, 0, 0)),            # x
            pl.BlockSpec((9, 1, M), lambda n: (0, 0, 0)),             # tap masks
            pl.BlockSpec((c_, C1), lambda n: (0, 0)),                 # cv1 W^T
            pl.BlockSpec((c_, 1), lambda n: (0, 0)),                  # cv1 b
            pl.BlockSpec((c_, C1), lambda n: (0, 0)),                 # cv2 W^T
            pl.BlockSpec((c_, 1), lambda n: (0, 0)),                  # cv2 b
            pl.BlockSpec((n_blocks, c_, c_), lambda n: (0, 0, 0)),    # m.cv1 W^T
            pl.BlockSpec((n_blocks, c_, 1), lambda n: (0, 0, 0)),     # m.cv1 b
            pl.BlockSpec((n_blocks, 9, c_, c_), lambda n: (0, 0, 0, 0)),  # m.cv2
            pl.BlockSpec((n_blocks, c_, 1), lambda n: (0, 0, 0)),     # m.cv2 b
            pl.BlockSpec((C2, c_), lambda n: (0, 0)),                 # cv3 W_h^T
            pl.BlockSpec((C2, c_), lambda n: (0, 0)),                 # cv3 W_y2^T
            pl.BlockSpec((C2, 1), lambda n: (0, 0)),                  # cv3 b
        ],
        out_specs=pl.BlockSpec((1, C2, M), lambda n: (n, 0, 0)),
    )

    out = pl.pallas_call(
        kernel,
        out_shape=jax.ShapeDtypeStruct((N, C2, M), x_nchw.dtype),
        grid_spec=grid_spec,
        compiler_params=pltpu.CompilerParams(
            dimension_semantics=("parallel",)),
    )(x_flat, masks, kp["w1"], kp["b1"], kp["w2"], kp["b2"],
      kp["wm1"], kp["bm1"], kp["wm2"], kp["bm2"],
      kp["w3h"], kp["w3y"], kp["b3"])
    return out.reshape(N, C2, H, W)          # free, contiguous reshape


# ----------------------------------------------------------------------------
# Parameter construction (deterministic, BN folded into conv, eval semantics)
# ----------------------------------------------------------------------------
def _make_conv_params(key, cin, cout, k):
    kw, kg, kb, km, kv = jax.random.split(key, 5)
    w = jax.random.normal(kw, (k, k, cin, cout), jnp.float32) * 0.1   # HWIO
    gamma = 1.0 + 0.1 * jax.random.normal(kg, (cout,), jnp.float32)
    beta = 0.1 * jax.random.normal(kb, (cout,), jnp.float32)
    mean = 0.1 * jax.random.normal(km, (cout,), jnp.float32)
    var = 1.0 + jnp.abs(jax.random.normal(kv, (cout,), jnp.float32))
    eps = 1e-5                                    # nn.BatchNorm2d default
    scale = gamma / jnp.sqrt(var + eps)
    return {"w": w * scale[None, None, None, :], "b": beta - mean * scale}


def make_c3_params(key, c1, c2, n=1, e=0.5):
    c_ = int(c2 * e)
    keys = jax.random.split(key, 3 + 2 * n)
    return {
        "cv1": _make_conv_params(keys[0], c1, c_, 1),
        "cv2": _make_conv_params(keys[1], c1, c_, 1),
        "cv3": _make_conv_params(keys[2], 2 * c_, c2, 1),
        # Bottleneck(c_, c_, e=1.0): cv1 1x1 c_->c_, cv2 3x3 c_->c_
        "m": [{"cv1": _make_conv_params(keys[3 + 2 * i], c_, c_, 1),
               "cv2": _make_conv_params(keys[4 + 2 * i], c_, c_, 3)}
              for i in range(n)],
    }


def prepare_kernel_params(params):
    """One-time repack of folded-BN weights into the fused kernel's layout."""
    f32 = jnp.float32
    c_ = params["cv1"]["w"].shape[-1]

    def wt(p):                                   # (1,1,Cin,Cout) -> (Cout,Cin)
        return jnp.transpose(p["w"][0, 0]).astype(f32)

    def bias(p):
        return p["b"].reshape(-1, 1).astype(f32)

    w3 = params["cv3"]["w"][0, 0]                # (2*c_, C2)
    return {
        "w1": wt(params["cv1"]), "b1": bias(params["cv1"]),
        "w2": wt(params["cv2"]), "b2": bias(params["cv2"]),
        "w3h": jnp.transpose(w3[:c_]).astype(f32),     # cv3 rows for h branch
        "w3y": jnp.transpose(w3[c_:]).astype(f32),     # cv3 rows for y2 branch
        "b3": bias(params["cv3"]),
        "wm1": jnp.stack([wt(bp["cv1"]) for bp in params["m"]]),
        "bm1": jnp.stack([bias(bp["cv1"]) for bp in params["m"]]),
        # 3x3 HWIO (3,3,Cin,Cout) -> (9, Cout, Cin), tap-major (ky, kx).
        "wm2": jnp.stack([
            jnp.transpose(bp["cv2"]["w"], (0, 1, 3, 2))
            .reshape(9, c_, c_).astype(f32) for bp in params["m"]]),
        "bm2": jnp.stack([bias(bp["cv2"]) for bp in params["m"]]),
    }


# ----------------------------------------------------------------------------
# Pure-JAX reference (same folded params) for correctness check
# ----------------------------------------------------------------------------
def _ref_conv(x, w, b, k):
    if k == 1:
        y = jnp.einsum("nhwc,co->nhwo", x, w[0, 0])
    else:
        y = lax.conv_general_dilated(
            x, w, window_strides=(1, 1), padding="SAME",
            dimension_numbers=("NHWC", "HWIO", "NHWC"))
    return _silu(y + b)


def c3_reference(x_nchw, params, shortcut=True):
    x = jnp.transpose(x_nchw, (0, 2, 3, 1))
    y1 = _ref_conv(x, params["cv1"]["w"], params["cv1"]["b"], 1)
    y2 = _ref_conv(x, params["cv2"]["w"], params["cv2"]["b"], 1)
    h = y1
    for bp in params["m"]:
        t = _ref_conv(h, bp["cv1"]["w"], bp["cv1"]["b"], 1)
        o = _ref_conv(t, bp["cv2"]["w"], bp["cv2"]["b"], 3)
        h = h + o if shortcut else o
    cat = jnp.concatenate([h, y2], axis=-1)
    out = _ref_conv(cat, params["cv3"]["w"], params["cv3"]["b"], 1)
    return jnp.transpose(out, (0, 3, 1, 2))


if __name__ == "__main__":
    key = jax.random.PRNGKey(0)
    k_x, k_p = jax.random.split(key)

    # Small shapes consistent with C3(c1=8, c2=8, n=1); x is NCHW.
    N, C1, H, W = 2, 8, 16, 16
    C2, n_blocks = 8, 1
    x = jax.random.normal(k_x, (N, C1, H, W), jnp.float32)

    params = make_c3_params(k_p, C1, C2, n=n_blocks, e=0.5)
    kparams = prepare_kernel_params(params)

    out = jax.block_until_ready(c3_forward(x, kparams, shortcut=True))
    ref = jax.block_until_ready(c3_reference(x, params, shortcut=True))

    assert out.shape == (N, C2, H, W), out.shape
    err = float(jnp.max(jnp.abs(out - ref)))
    assert err < 1e-3, err
    print("KERNEL_OK")
</pallas_src>

<mosaic_0001>
module attributes {stable_mosaic.version = 11 : i64} {
  func.func @k(%arg0: memref<1x128xf32, #tpu.memory_space<vmem>>, %arg1: memref<1x128xf32, #tpu.memory_space<vmem>>) attributes {dimension_semantics = [], scalar_prefetch = 0 : i64, scratch_operands = 0 : i64, tpu.core_type = #tpu.core_type<tc>} {
    %c0 = arith.constant 0 : index
    %c0_0 = arith.constant 0 : index
    %0 = vector.load %arg0[%c0, %c0_0] : memref<1x128xf32, #tpu.memory_space<vmem>>, vector<1x128xf32>
    %c1_i32 = arith.constant 1 : i32
    %1 = tpu.dynamic_rotate %0 by %c1_i32 dim 1 : vector<1x128xf32>, i32 -> vector<1x128xf32>
    %c0_1 = arith.constant 0 : index
    %c0_2 = arith.constant 0 : index
    %2 = vector.load %arg1[%c0_1, %c0_2] : memref<1x128xf32, #tpu.memory_space<vmem>>, vector<1x128xf32>
    tpu.vector_store %arg1[%c0_1, %c0_2], %1 {strides = array<i32>} : memref<1x128xf32, #tpu.memory_space<vmem>>, vector<1x128xf32>,
    return
  }
}

</mosaic_0001>

<bundles_post_ra>
// kernel: tpu_custom_call.1
= control target key start
LH: loop header
LB: loop body
LE: loop exit
PB: predicated region body
PF: predicated region fallthrough
CT: control target
= control target key end

     0   :  { %6 = vsyncpa [#allocation3], 0  ;;  %s128_s0 = inlined_call_operand.hbm [shape: f32[1,128], index: 0, kind: input, shape index: {}]   ;;  %s129_s1 = inlined_call_operand.hbm [shape: f32[1,128], index: 1, kind: output, shape index: {}]  }
   0x1   :  { %7 = vsyncpa [#allocation4], 0  ;;  %s91_s6 = smov [#allocation2]   ;;  %s43_s10 = scalar_lea.hbm %s128_s0, 16 }
   0x2   :  { %s14_s7 = sshll.u32 %s91_s6, 4  ;;  %p44_p0 = scmp.ne.s32.totalorder %s128_s0, %s43_s10  ;;  %s15_s7 = int_to_ptr.vmem [resolvable:$true] %s14_s7 }
   0x3   :  { %p47_p1 = scmp.lt.u32.totalorder %s43_s10, %s128_s0 }
   0x5   :  { %p49_p2 = pnand %p47_p1, %p44_p0 }
   0x7   :  { %52 = shalt.err (!%p49_p2)
}
   0x8   :  { %s53_s15 = scalar_lea.vmem %s15_s7, 16  ;;  %s57_s16 = scalar_lea.vmem %s15_s7, 32 }
   0x9   :  { %p54_p3 = scmp.ne.s32.totalorder %s15_s7, %s53_s15  ;;  %p58_p4 = scmp.lt.s32.totalorder %s15_s7, %s15_s7 }
   0xa   :  { %p59_p5 = scmp.lt.s32.totalorder %s57_s16, %s53_s15 }
   0xc   :  { %p60_p6 = por %p59_p5, %p58_p4 }
   0xe   :  { %p61_p7 = pnand %p60_p6, %p54_p3 }
  0x10   :  { %64 = shalt.err (!%p61_p7)
}
  0x11   :  { %17 = dma.hbm_to_vmem [thread:$0]  %s128_s0, 16, %s15_s7, [#allocation3]  }
  0x12   :  { %87 = dma.done.wait [#allocation3], 16  }
  0x13   :  { %88 = vsyncadd [#allocation3], 4294967280  ;;  %v21_v0 = vld [vmem:[#allocation2] sm:$0x1]  ;;  %s92_s19 = smov 1   ;;  %s93_s20 = smov [#allocation5]  }
  0x14   :  { %22 = vrot.lane.b32.xlu0 %v21_v0, %s92_s19  ;;  %s31_s21 = sshll.u32 %s93_s20, 4  ;;  %s32_s21 = int_to_ptr.vmem [resolvable:$true] %s31_s21 }
  0x15   :  { %s65_s22 = scalar_lea.vmem %s32_s21, 16  ;;  %s69_s23 = scalar_lea.vmem %s32_s21, 32 }
  0x16   :  { %p66_p8 = scmp.ne.s32.totalorder %s32_s21, %s65_s22  ;;  %p70_p9 = scmp.lt.s32.totalorder %s32_s21, %s32_s21 }
  0x17   :  { %p71_p10 = scmp.lt.s32.totalorder %s69_s23, %s65_s22 }
  0x19   :  { %p72_p11 = por %p71_p10, %p70_p9 }
  0x1b   :  { %p73_p12 = pnand %p72_p11, %p66_p8 }
  0x86   :  { %v23_v1 = vpop.permute.xlu0 %22 }
  0x87   :  { %24 = vst [vmem:[#allocation5] sm:$0x1] %v23_v1 }
  0x88   :  { %76 = shalt.err (!%p73_p12)
}
  0x89   :  { %s77_s25 = scalar_lea.hbm %s129_s1, 16 }
  0x8a   :  { %p78_p13 = scmp.ne.s32.totalorder %s129_s1, %s77_s25  ;;  %p81_p0 = scmp.lt.u32.totalorder %s77_s25, %s129_s1 }
  0x8c   :  { %p83_p1 = pnand %p81_p0, %p78_p13 }
  0x8e   :  { %86 = shalt.err (!%p83_p1)
}
  0x8f   :  { %34 = dma.vmem_to_hbm [thread:$0]  %s32_s21, 16, %s129_s1, [#allocation4]  }
  0x90   :  { %89 = dma.done.wait [#allocation4], 16  }
  0x91   :  { %90 = vsyncadd [#allocation4], 4294967280 }
  0x92   :  { %38 = vsyncpa [#allocation3], 1 }
  0x93   :  { %39 = vsyncpa [#allocation4], 1 }

</bundles_post_ra>
